<compile_context>
chip_gen: v7x
topology: tpu7x:2x2x1
jax: 0.10.0
libtpu: 0.0.40
codegen_flags: <defaults>
</compile_context>

<pallas_src>
import jax
import jax.numpy as jnp
from jax.experimental import pallas as pl
from jax.experimental.pallas import tpu as pltpu

_HALF = 0.5
_K2 = 0.7978845608028654          # sqrt(2/pi)
_K1K2 = 0.044715 * _K2            # folded at trace time (Horner form)

LANE = 128
TILE_BYTES = 2 * 1024 * 1024      # ~2 MiB of the *native* dtype per stream per block
MIN_TILE_BYTES = 512 * 1024       # don't shrink blocks below this when balancing


def _gelu_tanh(x):
    # 0.5*x*(tanh(sqrt(2/pi) * x * (1 + 0.044715*x^2)) + 1)
    # Horner: inner = x * (K2 + (K1*K2)*x^2)  — one fewer multiply/reassociation
    # per element than the naive (x + 0.044715*x^3)*K2 expansion.
    inner = x * (_K2 + _K1K2 * (x * x))
    return (x * _HALF) * (jnp.tanh(inner) + 1.0)


def _kernel(x1_ref, x2_ref, x3_ref, x4_ref, o_ref):
    # Cast to f32 inside the kernel so HBM traffic stays in the native dtype.
    s = (_gelu_tanh(x1_ref[...].astype(jnp.float32))
         + _gelu_tanh(x2_ref[...].astype(jnp.float32))
         + _gelu_tanh(x3_ref[...].astype(jnp.float32))
         + _gelu_tanh(x4_ref[...].astype(jnp.float32)))
    o_ref[...] = (jnp.tanh(s * _K2) + 1.0).astype(o_ref.dtype)


def _choose_tile_rows(rows: int, lanes: int, itemsize: int) -> int:
    """Pick a row-tile: ~TILE_BYTES per stream, sublane-aligned, and (for v7x
    megacore) preferring an even block count with >= 8 pipeline steps."""
    row_bytes = lanes * itemsize
    tr_max = max(8, (TILE_BYTES // row_bytes) // 8 * 8)
    if tr_max >= rows:
        return rows                                   # single full-array block
    nblocks = -(-rows // tr_max)
    min_rows = max(8, (MIN_TILE_BYTES // row_bytes) // 8 * 8)
    target = max(nblocks + (nblocks % 2), 8)          # even and >= 8 steps
    max_blocks = max(1, rows // min_rows)             # keep blocks >= MIN_TILE_BYTES
    if target > max_blocks:
        target = max_blocks - (max_blocks % 2) if max_blocks > 1 else max_blocks
        target = max(target, nblocks)
    tr = -(-rows // target)
    tr = -(-tr // 8) * 8                              # sublane multiple
    return min(max(tr, 8), rows)


def fused_quad_gelu(x1, x2, x3, x4):
    assert x1.shape == x2.shape == x3.shape == x4.shape
    orig_shape = x1.shape
    orig_dtype = x1.dtype
    itemsize = jnp.dtype(orig_dtype).itemsize
    n = x1.size

    # Widest lane dim (multiple of 128) dividing n: lane-dense output -> fully
    # unmasked vst and long contiguous DMA lines, no wrapper-side pad copy in
    # the common case (the production shape 1x128x100x120 = 1_536_000 -> 1024).
    pad = 0
    lanes = LANE
    for w in (1024, 512, 256, 128):
        if n % w == 0:
            lanes = w
            break
    else:
        pad = (-n) % LANE  # rare fallback; costs 4 extra wrapper-side copies

    n_pad = n + pad
    rows = n_pad // lanes

    def prep(x):
        xf = x.reshape(-1)          # native dtype; no astype pass in the wrapper
        if pad:
            xf = jnp.pad(xf, (0, pad))
        return xf.reshape(rows, lanes)

    a1, a2, a3, a4 = prep(x1), prep(x2), prep(x3), prep(x4)

    tile_rows = _choose_tile_rows(rows, lanes, itemsize)
    grid = (pl.cdiv(rows, tile_rows),)   # masked boundary handles a partial tail

    spec = pl.BlockSpec((tile_rows, lanes), lambda i: (i, 0))

    # Advisory cost: ~33 VALU flops + 5 transcendentals per element, 5 HBM passes.
    cost = pl.CostEstimate(
        flops=33 * n_pad,
        transcendentals=5 * n_pad,
        bytes_accessed=5 * n_pad * itemsize,
    )

    out = pl.pallas_call(
        _kernel,
        out_shape=jax.ShapeDtypeStruct((rows, lanes), orig_dtype),
        grid_spec=pl.GridSpec(
            grid=grid,
            in_specs=[spec, spec, spec, spec],
            out_specs=spec,
        ),
        compiler_params=pltpu.CompilerParams(
            dimension_semantics=("parallel",),   # megacore sharding on v7x
            vmem_limit_bytes=32 * 1024 * 1024,   # ~20 MiB actually used; fits all gens
        ),
        cost_estimate=cost,
    )(a1, a2, a3, a4)

    out = out.reshape(-1)
    if pad:
        out = out[:n]
    return out.reshape(orig_shape)


def _ref(x1, x2, x3, x4):
    # Literal translation of the torch module (non-Horner ordering).
    def g(x):
        xf = x.astype(jnp.float32)
        x3 = xf * xf * xf
        return (xf * 0.5) * (jnp.tanh((xf + 0.044715 * x3) * _K2) + 1.0)
    s = g(x1) + g(x2) + g(x3) + g(x4)
    return (jnp.tanh(s * _K2) + 1.0).astype(x1.dtype)


if __name__ == "__main__":
    key = jax.random.PRNGKey(0)
    k1, k2, k3, k4 = jax.random.split(key, 4)
    shape = (2, 4, 16, 16)  # small NCHW-shaped inputs (original: 1,128,100,120)
    x1 = jax.random.normal(k1, shape, dtype=jnp.float32)
    x2 = jax.random.normal(k2, shape, dtype=jnp.float32)
    x3 = jax.random.normal(k3, shape, dtype=jnp.float32)
    x4 = jax.random.normal(k4, shape, dtype=jnp.float32)

    out = fused_quad_gelu(x1, x2, x3, x4)
    jax.block_until_ready(out)

    ref = _ref(x1, x2, x3, x4)
    assert out.shape == shape
    assert jnp.allclose(out, ref, atol=1e-5, rtol=1e-5)
    print("KERNEL_OK")
</pallas_src>

<mosaic_0001>
module attributes {stable_mosaic.version = 11 : i64} {
  func.func @_kernel(%arg0: i32, %arg1: memref<2x1024xf32, #tpu.memory_space<vmem>>, %arg2: memref<2x1024xf32, #tpu.memory_space<vmem>>, %arg3: memref<2x1024xf32, #tpu.memory_space<vmem>>, %arg4: memref<2x1024xf32, #tpu.memory_space<vmem>>, %arg5: memref<2x1024xf32, #tpu.memory_space<vmem>>) attributes {dimension_semantics = [#tpu.dimension_semantics<parallel>], iteration_bounds = array<i64: 1>, scalar_prefetch = 0 : i64, scratch_operands = 0 : i64, tpu.core_type = #tpu.core_type<tc>, window_params = [{transform_indices = @transform_0, window_bounds = array<i64: 2, 1024>}, {transform_indices = @transform_1, window_bounds = array<i64: 2, 1024>}, {transform_indices = @transform_2, window_bounds = array<i64: 2, 1024>}, {transform_indices = @transform_3, window_bounds = array<i64: 2, 1024>}, {transform_indices = @transform_4, window_bounds = array<i64: 2, 1024>}]} {
    %c0 = arith.constant 0 : index
    %c0_0 = arith.constant 0 : index
    %0 = vector.load %arg1[%c0, %c0_0] : memref<2x1024xf32, #tpu.memory_space<vmem>>, vector<2x1024xf32>
    %1 = arith.mulf %0, %0 : vector<2x1024xf32>
    %cst = arith.constant 0.0356774069 : f32
    %2 = vector.broadcast %cst : f32 to vector<2x1024xf32>
    %3 = arith.mulf %2, %1 : vector<2x1024xf32>
    %cst_1 = arith.constant 0.797884583 : f32
    %4 = vector.broadcast %cst_1 : f32 to vector<2x1024xf32>
    %5 = arith.addf %4, %3 : vector<2x1024xf32>
    %6 = arith.mulf %0, %5 : vector<2x1024xf32>
    %cst_2 = arith.constant 5.000000e-01 : f32
    %7 = vector.broadcast %cst_2 : f32 to vector<2x1024xf32>
    %8 = arith.mulf %0, %7 : vector<2x1024xf32>
    %9 = math.tanh %6 : vector<2x1024xf32>
    %cst_3 = arith.constant 1.000000e+00 : f32
    %10 = vector.broadcast %cst_3 : f32 to vector<2x1024xf32>
    %11 = arith.addf %9, %10 : vector<2x1024xf32>
    %12 = arith.mulf %8, %11 : vector<2x1024xf32>
    %c0_4 = arith.constant 0 : index
    %c0_5 = arith.constant 0 : index
    %13 = vector.load %arg2[%c0_4, %c0_5] : memref<2x1024xf32, #tpu.memory_space<vmem>>, vector<2x1024xf32>
    %14 = arith.mulf %13, %13 : vector<2x1024xf32>
    %cst_6 = arith.constant 0.0356774069 : f32
    %15 = vector.broadcast %cst_6 : f32 to vector<2x1024xf32>
    %16 = arith.mulf %15, %14 : vector<2x1024xf32>
    %cst_7 = arith.constant 0.797884583 : f32
    %17 = vector.broadcast %cst_7 : f32 to vector<2x1024xf32>
    %18 = arith.addf %17, %16 : vector<2x1024xf32>
    %19 = arith.mulf %13, %18 : vector<2x1024xf32>
    %cst_8 = arith.constant 5.000000e-01 : f32
    %20 = vector.broadcast %cst_8 : f32 to vector<2x1024xf32>
    %21 = arith.mulf %13, %20 : vector<2x1024xf32>
    %22 = math.tanh %19 : vector<2x1024xf32>
    %cst_9 = arith.constant 1.000000e+00 : f32
    %23 = vector.broadcast %cst_9 : f32 to vector<2x1024xf32>
    %24 = arith.addf %22, %23 : vector<2x1024xf32>
    %25 = arith.mulf %21, %24 : vector<2x1024xf32>
    %26 = arith.addf %12, %25 : vector<2x1024xf32>
    %c0_10 = arith.constant 0 : index
    %c0_11 = arith.constant 0 : index
    %27 = vector.load %arg3[%c0_10, %c0_11] : memref<2x1024xf32, #tpu.memory_space<vmem>>, vector<2x1024xf32>
    %28 = arith.mulf %27, %27 : vector<2x1024xf32>
    %cst_12 = arith.constant 0.0356774069 : f32
    %29 = vector.broadcast %cst_12 : f32 to vector<2x1024xf32>
    %30 = arith.mulf %29, %28 : vector<2x1024xf32>
    %cst_13 = arith.constant 0.797884583 : f32
    %31 = vector.broadcast %cst_13 : f32 to vector<2x1024xf32>
    %32 = arith.addf %31, %30 : vector<2x1024xf32>
    %33 = arith.mulf %27, %32 : vector<2x1024xf32>
    %cst_14 = arith.constant 5.000000e-01 : f32
    %34 = vector.broadcast %cst_14 : f32 to vector<2x1024xf32>
    %35 = arith.mulf %27, %34 : vector<2x1024xf32>
    %36 = math.tanh %33 : vector<2x1024xf32>
    %cst_15 = arith.constant 1.000000e+00 : f32
    %37 = vector.broadcast %cst_15 : f32 to vector<2x1024xf32>
    %38 = arith.addf %36, %37 : vector<2x1024xf32>
    %39 = arith.mulf %35, %38 : vector<2x1024xf32>
    %40 = arith.addf %26, %39 : vector<2x1024xf32>
    %c0_16 = arith.constant 0 : index
    %c0_17 = arith.constant 0 : index
    %41 = vector.load %arg4[%c0_16, %c0_17] : memref<2x1024xf32, #tpu.memory_space<vmem>>, vector<2x1024xf32>
    %42 = arith.mulf %41, %41 : vector<2x1024xf32>
    %cst_18 = arith.constant 0.0356774069 : f32
    %43 = vector.broadcast %cst_18 : f32 to vector<2x1024xf32>
    %44 = arith.mulf %43, %42 : vector<2x1024xf32>
    %cst_19 = arith.constant 0.797884583 : f32
    %45 = vector.broadcast %cst_19 : f32 to vector<2x1024xf32>
    %46 = arith.addf %45, %44 : vector<2x1024xf32>
    %47 = arith.mulf %41, %46 : vector<2x1024xf32>
    %cst_20 = arith.constant 5.000000e-01 : f32
    %48 = vector.broadcast %cst_20 : f32 to vector<2x1024xf32>
    %49 = arith.mulf %41, %48 : vector<2x1024xf32>
    %50 = math.tanh %47 : vector<2x1024xf32>
    %cst_21 = arith.constant 1.000000e+00 : f32
    %51 = vector.broadcast %cst_21 : f32 to vector<2x1024xf32>
    %52 = arith.addf %50, %51 : vector<2x1024xf32>
    %53 = arith.mulf %49, %52 : vector<2x1024xf32>
    %54 = arith.addf %40, %53 : vector<2x1024xf32>
    %cst_22 = arith.constant 0.797884583 : f32
    %55 = vector.broadcast %cst_22 : f32 to vector<2x1024xf32>
    %56 = arith.mulf %54, %55 : vector<2x1024xf32>
    %57 = math.tanh %56 : vector<2x1024xf32>
    %cst_23 = arith.constant 1.000000e+00 : f32
    %58 = vector.broadcast %cst_23 : f32 to vector<2x1024xf32>
    %59 = arith.addf %57, %58 : vector<2x1024xf32>
    %c0_24 = arith.constant 0 : index
    %c0_25 = arith.constant 0 : index
    %60 = vector.load %arg5[%c0_24, %c0_25] : memref<2x1024xf32, #tpu.memory_space<vmem>>, vector<2x1024xf32>
    tpu.vector_store %arg5[%c0_24, %c0_25], %59 {strides = array<i32>} : memref<2x1024xf32, #tpu.memory_space<vmem>>, vector<2x1024xf32>,
    return
  }
  func.func @transform_0(%arg0: i32) -> (i32, i32) {
    %c0_i32 = arith.constant 0 : i32
    %c0_i32_0 = arith.constant 0 : i32
    return %arg0, %c0_i32 : i32, i32
  }
  func.func @transform_1(%arg0: i32) -> (i32, i32) {
    %c0_i32 = arith.constant 0 : i32
    %c0_i32_0 = arith.constant 0 : i32
    return %arg0, %c0_i32 : i32, i32
  }
  func.func @transform_2(%arg0: i32) -> (i32, i32) {
    %c0_i32 = arith.constant 0 : i32
    %c0_i32_0 = arith.constant 0 : i32
    return %arg0, %c0_i32 : i32, i32
  }
  func.func @transform_3(%arg0: i32) -> (i32, i32) {
    %c0_i32 = arith.constant 0 : i32
    %c0_i32_0 = arith.constant 0 : i32
    return %arg0, %c0_i32 : i32, i32
  }
  func.func @transform_4(%arg0: i32) -> (i32, i32) {
    %c0_i32 = arith.constant 0 : i32
    %c0_i32_0 = arith.constant 0 : i32
    return %arg0, %c0_i32 : i32, i32
  }
}

</mosaic_0001>

<bundles_post_ra>
// kernel: tpu_custom_call.1
= control target key start
LH: loop header
LB: loop body
LE: loop exit
PB: predicated region body
PF: predicated region fallthrough
CT: control target
= control target key end

     0   :  { %9 = vsyncpa [#allocation3], 0  ;;  %s401_s0 = inlined_call_operand.hbm [shape: f32[2,1024], index: 0, kind: input, shape index: {}]   ;;  %s402_s1 = inlined_call_operand.hbm [shape: f32[2,1024], index: 1, kind: input, shape index: {}]   ;;  %s403_s2 = inlined_call_operand.hbm [shape: f32[2,1024], index: 2, kind: input, shape index: {}]   ;;  %s404_s3 = inlined_call_operand.hbm [shape: f32[2,1024], index: 3, kind: input, shape index: {}]   ;;  %s405_s4 = inlined_call_operand.hbm [shape: f32[2,1024], index: 4, kind: output, shape index: {}]  }
   0x1   :  { %10 = vsyncpa [#allocation6], 0 }
   0x2   :  { %11 = vsyncpa [#allocation9], 0 }
   0x3   :  { %12 = vsyncpa [#allocation4], 0  ;;  %s311_s15 = smov [#allocation5]   ;;  %s312_s17 = smov [#allocation2]  }
   0x4   :  { %s29_s16 = sshll.u32 %s311_s15, 4  ;;  %s19_s18 = sshll.u32 %s312_s17, 4  ;;  %s30_s16 = int_to_ptr.vmem [resolvable:$true] %s29_s16  ;;  %s20_s18 = int_to_ptr.vmem [resolvable:$true] %s19_s18 }
   0x5   :  { %s193_s21 = scalar_lea.hbm %s402_s1, 256 }
   0x6   :  { %p194_p0 = scmp.ne.s32.totalorder %s402_s1, %s193_s21  ;;  %p197_p1 = scmp.lt.u32.totalorder %s193_s21, %s402_s1 }
   0x8   :  { %p199_p2 = pnand %p197_p1, %p194_p0 }
   0xa   :  { %202 = shalt.err (!%p199_p2)
}
   0xb   :  { %s203_s26 = scalar_lea.vmem %s30_s16, 256  ;;  %p208_p4 = scmp.lt.s32.totalorder %s30_s16, %s30_s16 }
   0xc   :  { %p204_p3 = scmp.ne.s32.totalorder %s30_s16, %s203_s26  ;;  %p209_p5 = scmp.lt.s32.totalorder %s203_s26, %s203_s26 }
   0xe   :  { %p210_p6 = por %p209_p5, %p208_p4 }
  0x10   :  { %p211_p7 = pnand %p210_p6, %p204_p3 }
  0x12   :  { %214 = shalt.err (!%p211_p7)
}
  0x13   :  { %32 = dma.hbm_to_vmem [thread:$0]  %s402_s1, 256, %s30_s16, [#allocation6]  }
  0x14   :  { %s215_s5 = scalar_lea.hbm %s401_s0, 256 }
  0x15   :  { %p216_p8 = scmp.ne.s32.totalorder %s401_s0, %s215_s5  ;;  %p219_p9 = scmp.lt.u32.totalorder %s215_s5, %s401_s0 }
  0x17   :  { %p221_p10 = pnand %p219_p9, %p216_p8 }
  0x19   :  { %224 = shalt.err (!%p221_p10)
}
  0x1a   :  { %s225_s10 = scalar_lea.vmem %s20_s18, 256  ;;  %p230_p12 = scmp.lt.s32.totalorder %s20_s18, %s20_s18 }
  0x1b   :  { %p226_p11 = scmp.ne.s32.totalorder %s20_s18, %s225_s10  ;;  %p231_p13 = scmp.lt.s32.totalorder %s225_s10, %s225_s10 }
  0x1d   :  { %p232_p0 = por %p231_p13, %p230_p12 }
  0x1f   :  { %p233_p1 = pnand %p232_p0, %p226_p11 }
  0x21   :  { %236 = shalt.err (!%p233_p1)
}
  0x22   :  { %22 = dma.hbm_to_vmem [thread:$0]  %s401_s0, 256, %s20_s18, [#allocation3]  }
  0x23   :  { %s313_s12 = smov [#allocation7]   ;;  %s314_s14 = smov [#allocation8]  }
  0x24   :  { %s39_s13 = sshll.u32 %s313_s12, 4  ;;  %s49_s15 = sshll.u32 %s314_s14, 4  ;;  %s40_s13 = int_to_ptr.vmem [resolvable:$true] %s39_s13  ;;  %s50_s15 = int_to_ptr.vmem [resolvable:$true] %s49_s15 }
  0x25   :  { %s237_s19 = scalar_lea.hbm %s403_s2, 256 }
  0x26   :  { %p238_p2 = scmp.ne.s32.totalorder %s403_s2, %s237_s19  ;;  %p241_p3 = scmp.lt.u32.totalorder %s237_s19, %s403_s2 }
  0x28   :  { %p243_p4 = pnand %p241_p3, %p238_p2 }
  0x2a   :  { %246 = shalt.err (!%p243_p4)
}
  0x2b   :  { %s247_s0 = scalar_lea.vmem %s40_s13, 256  ;;  %p252_p6 = scmp.lt.s32.totalorder %s40_s13, %s40_s13 }
  0x2c   :  { %p248_p5 = scmp.ne.s32.totalorder %s40_s13, %s247_s0  ;;  %p253_p7 = scmp.lt.s32.totalorder %s247_s0, %s247_s0 }
  0x2e   :  { %p254_p8 = por %p253_p7, %p252_p6 }
  0x30   :  { %p255_p9 = pnand %p254_p8, %p248_p5 }
  0x32   :  { %258 = shalt.err (!%p255_p9)
}
  0x33   :  { %42 = dma.hbm_to_vmem [thread:$0]  %s403_s2, 256, %s40_s13, [#allocation6]  }
  0x34   :  { %s259_s27 = scalar_lea.hbm %s404_s3, 256 }
  0x35   :  { %p260_p10 = scmp.ne.s32.totalorder %s404_s3, %s259_s27  ;;  %p263_p11 = scmp.lt.u32.totalorder %s259_s27, %s404_s3 }
  0x37   :  { %p265_p12 = pnand %p263_p11, %p260_p10 }
  0x39   :  { %268 = shalt.err (!%p265_p12)
}
  0x3a   :  { %s269_s6 = scalar_lea.vmem %s50_s15, 256  ;;  %p274_p0 = scmp.lt.s32.totalorder %s50_s15, %s50_s15 }
  0x3b   :  { %p270_p13 = scmp.ne.s32.totalorder %s50_s15, %s269_s6  ;;  %p275_p1 = scmp.lt.s32.totalorder %s269_s6, %s269_s6 }
  0x3d   :  { %p276_p2 = por %p275_p1, %p274_p0 }
  0x3f   :  { %p277_p3 = pnand %p276_p2, %p270_p13 }
  0x41   :  { %280 = shalt.err (!%p277_p3)
}
  0x42   :  { %52 = dma.hbm_to_vmem [thread:$0]  %s404_s3, 256, %s50_s15, [#allocation9]  }
  0x43   :  { %303 = dma.done.wait [#allocation3], 256  }
  0x44   :  { %304 = vsyncadd [#allocation3], 4294967040 }
  0x45   :  { %305 = dma.done.wait [#allocation6], 512  }
  0x46   :  { %306 = vsyncadd [#allocation6], 4294966784 }
  0x47   :  { %307 = dma.done.wait [#allocation9], 256  }
  0x48   :  { %308 = vsyncadd [#allocation9], 4294967040  ;;  %v65_v0 = vld [vmem:[#allocation2] sm:$0xff]  ;;  %v83_v1 = vld [vmem:[#allocation5] sm:$0xff]  ;;  %s315_s3 = smov [#allocation10]  }
  0x49   :  { %v103_v2 = vld [vmem:[#allocation7] sm:$0xff]  ;;  %v67_v3 = vmul.f32 %v65_v0, %v65_v0  ;;  %v85_v4 = vmul.f32 %v83_v1, %v83_v1  ;;  %v123_v5 = vld [vmem:[#allocation8] sm:$0xff]  ;;  %v66_v6 = vld [vmem:[#allocation2 + $0x8] sm:$0xff]  ;;  %v75_v40 = vmul.f32 0.5, %v65_v0  ;;  %v93_v42 = vmul.f32 0.5, %v83_v1  ;;  %s157_s8 = sshll.u32 %s315_s3, 4  ;;  %s158_s8 = int_to_ptr.vmem [resolvable:$true] %s157_s8 }
  0x4a   :  { %v84_v7 = vld [vmem:[#allocation5 + $0x8] sm:$0xff]  ;;  %v105_v8 = vmul.f32 %v103_v2, %v103_v2  ;;  %v125_v9 = vmul.f32 %v123_v5, %v123_v5  ;;  %v104_v10 = vld [vmem:[#allocation7 + $0x8] sm:$0xff]  ;;  %v68_v13 = vmul.f32 %v66_v6, %v66_v6  ;;  %v113_v45 = vmul.f32 0.5, %v103_v2  ;;  %s281_s9 = scalar_lea.vmem %s158_s8, 256  ;;  %p286_p5 = scmp.lt.s32.totalorder %s158_s8, %s158_s8 }
  0x4b   :  { %v69_v11 = vmul.f32 0.035677407, %v67_v3  ;;  %v87_v12 = vmul.f32 0.035677407, %v85_v4  ;;  %v124_v14 = vld [vmem:[#allocation8 + $0x8] sm:$0xff]  ;;  %v86_v17 = vmul.f32 %v84_v7, %v84_v7  ;;  %v106_v21 = vmul.f32 %v104_v10, %v104_v10  ;;  %p282_p4 = scmp.ne.s32.totalorder %s158_s8, %s281_s9  ;;  %p287_p6 = scmp.lt.s32.totalorder %s281_s9, %s281_s9 }
  0x4c   :  { %v107_v15 = vmul.f32 0.035677407, %v105_v8  ;;  %v127_v16 = vmul.f32 0.035677407, %v125_v9  ;;  %v70_v20 = vmul.f32 0.035677407, %v68_v13  ;;  %v126_v25 = vmul.f32 %v124_v14, %v124_v14 }
  0x4d   :  { %v71_v18 = vadd.f32 0.7978846, %v69_v11  ;;  %v89_v19 = vadd.f32 0.7978846, %v87_v12  ;;  %v88_v24 = vmul.f32 0.035677407, %v86_v17  ;;  %p288_p7 = por %p287_p6, %p286_p5 }
  0x4e   :  { %v109_v22 = vadd.f32 0.7978846, %v107_v15  ;;  %v129_v23 = vadd.f32 0.7978846, %v127_v16  ;;  %v72_v28 = vadd.f32 0.7978846, %v70_v20 }
  0x4f   :  { %v73_v26 = vmul.f32 %v71_v18, %v65_v0  ;;  %v91_v27 = vmul.f32 %v89_v19, %v83_v1  ;;  %v108_v29 = vmul.f32 0.035677407, %v106_v21  ;;  %v90_v32 = vadd.f32 0.7978846, %v88_v24  ;;  %p289_p8 = pnand %p288_p7, %p282_p4 }
  0x50   :  { %v111_v30 = vmul.f32 %v109_v22, %v103_v2  ;;  %v131_v31 = vmul.f32 %v129_v23, %v123_v5  ;;  %v74_v33 = vmul.f32 %v72_v28, %v66_v6  ;;  %v128_v35 = vmul.f32 0.035677407, %v126_v25 }
  0x51   :  { %173 = vtanh.f32 %v73_v26  ;;  %v110_v34 = vadd.f32 0.7978846, %v108_v29  ;;  %v92_v36 = vmul.f32 %v90_v32, %v84_v7  ;;  %v133_v48 = vmul.f32 0.5, %v123_v5 }
  0x52   :  { %175 = vtanh.f32 %v91_v27  ;;  %v130_v38 = vadd.f32 0.7978846, %v128_v35  ;;  %v76_v52 = vmul.f32 0.5, %v66_v6  ;;  %v94_v56 = vmul.f32 0.5, %v84_v7 }
  0x53   :  { %177 = vtanh.f32 %v111_v30  ;;  %v112_v37 = vmul.f32 %v110_v34, %v104_v10  ;;  %v114_v60 = vmul.f32 0.5, %v104_v10  ;;  %v134_v1 = vmul.f32 0.5, %v124_v14 }
  0x54   :  { %179 = vtanh.f32 %v131_v31  ;;  %v132_v39 = vmul.f32 %v130_v38, %v124_v14 }
  0x55   :  { %181 = vtanh.f32 %v74_v33 }
  0x56   :  { %183 = vtanh.f32 %v92_v36 }
  0x57   :  { %185 = vtanh.f32 %v112_v37 }
  0x58   :  { %187 = vtanh.f32 %v132_v39 }
  0x5b   :  { %v174_v41 = vpop.eup %173 }
  0x5c   :  { %v176_v43 = vpop.eup %175  ;;  %v79_v44 = vadd.f32 1.0, %v174_v41 }
  0x5d   :  { %v178_v46 = vpop.eup %177  ;;  %v97_v47 = vadd.f32 1.0, %v176_v43 }
  0x5e   :  { %v180_v49 = vpop.eup %179  ;;  %v81_v50 = vmul.f32 %v79_v44, %v75_v40  ;;  %v117_v51 = vadd.f32 1.0, %v178_v46 }
  0x5f   :  { %v182_v53 = vpop.eup %181  ;;  %v99_v54 = vmul.f32 %v97_v47, %v93_v42  ;;  %v137_v55 = vadd.f32 1.0, %v180_v49 }
  0x60   :  { %v184_v57 = vpop.eup %183  ;;  %v119_v58 = vmul.f32 %v117_v51, %v113_v45  ;;  %v80_v59 = vadd.f32 1.0, %v182_v53 }
  0x61   :  { %v186_v61 = vpop.eup %185  ;;  %v101_v62 = vadd.f32 %v99_v54, %v81_v50  ;;  %v139_v63 = vmul.f32 %v137_v55, %v133_v48  ;;  %v98_v0 = vadd.f32 1.0, %v184_v57 }
  0x62   :  { %v188_v2 = vpop.eup %187  ;;  %v82_v3 = vmul.f32 %v80_v59, %v76_v52  ;;  %v118_v4 = vadd.f32 1.0, %v186_v61 }
  0x63   :  { %v121_v5 = vadd.f32 %v119_v58, %v101_v62  ;;  %v100_v8 = vmul.f32 %v98_v0, %v94_v56  ;;  %v138_v9 = vadd.f32 1.0, %v188_v2 }
  0x64   :  { %v120_v6 = vmul.f32 %v118_v4, %v114_v60 }
  0x65   :  { %v141_v11 = vadd.f32 %v139_v63, %v121_v5  ;;  %v102_v12 = vadd.f32 %v100_v8, %v82_v3  ;;  %v140_v13 = vmul.f32 %v138_v9, %v134_v1 }
  0x67   :  { %v143_v7 = vmul.f32 0.7978846, %v141_v11  ;;  %v122_v15 = vadd.f32 %v120_v6, %v102_v12 }
  0x69   :  { %189 = vtanh.f32 %v143_v7  ;;  %v142_v16 = vadd.f32 %v140_v13, %v122_v15 }
  0x6b   :  { %v144_v10 = vmul.f32 0.7978846, %v142_v16 }
  0x6d   :  { %191 = vtanh.f32 %v144_v10 }
  0x73   :  { %v190_v17 = vpop.eup %189 }
  0x74   :  { %v147_v18 = vadd.f32 1.0, %v190_v17 }
  0x76   :  { %149 = vst [vmem:[#allocation10] sm:$0xff] %v147_v18 }
  0x77   :  { %v192_v14 = vpop.eup %191 }
  0x78   :  { %v148_v19 = vadd.f32 1.0, %v192_v14 }
  0x7a   :  { %150 = vst [vmem:[#allocation10 + $0x8] sm:$0xff] %v148_v19 }
  0x7b   :  { %292 = shalt.err (!%p289_p8)
}
  0x7c   :  { %s293_s11 = scalar_lea.hbm %s405_s4, 256 }
  0x7d   :  { %p294_p9 = scmp.ne.s32.totalorder %s405_s4, %s293_s11  ;;  %p297_p10 = scmp.lt.u32.totalorder %s293_s11, %s405_s4 }
  0x7f   :  { %p299_p11 = pnand %p297_p10, %p294_p9 }
  0x81   :  { %302 = shalt.err (!%p299_p11)
}
  0x82   :  { %160 = dma.vmem_to_hbm [thread:$0]  %s158_s8, 256, %s405_s4, [#allocation4]  }
  0x83   :  { %309 = dma.done.wait [#allocation4], 256  }
  0x84   :  { %310 = vsyncadd [#allocation4], 4294967040 }
  0x85   :  { %164 = vsyncpa [#allocation3], 1 }
  0x86   :  { %165 = vsyncpa [#allocation6], 1 }
  0x87   :  { %166 = vsyncpa [#allocation9], 1 }
  0x88   :  { %167 = vsyncpa [#allocation4], 1 }

</bundles_post_ra>
